<compile_context>
chip_gen: v7x
topology: tpu7x:2x2x1
jax: 0.10.0
libtpu: 0.0.40
codegen_flags: <defaults>
</compile_context>

<pallas_src>
import functools

import jax
import jax.numpy as jnp
from jax.experimental import pallas as pl
from jax.experimental.pallas import tpu as pltpu


# ---------------------------------------------------------------------------
# helpers
# ---------------------------------------------------------------------------

def _pick_tile(n, candidates=(512, 256, 128, 64, 32, 16, 8)):
    """Largest candidate tile (multiple of 8) that divides n, else full n."""
    for t in candidates:
        if n % t == 0:
            return t
    return n


# ---------------------------------------------------------------------------
# Pallas kernels
# ---------------------------------------------------------------------------

def _gru_cell_kernel(x_ref, h_ref, wih_t_ref, whh_t_ref, b_ref, o_ref):
    """torch.nn.GRUCell on a tile of observed rows.

    x_ref     : (N, D)     observed inputs (f32)
    h_ref     : (N, H)     gathered hidden rows (f32)
    wih_t_ref : (3, D, H)  per-gate W_i{r,z,n}^T   (bf16, MXU operands)
    whh_t_ref : (3, H, H)  per-gate W_h{r,z,n}^T   (bf16)
    b_ref     : (4, H)     rows = [b_r (folded), b_z (folded), b_in, b_hn] (f32)
    o_ref     : (N, H)     updated hidden rows
    """
    x32 = x_ref[...].astype(jnp.float32)
    h32 = h_ref[...].astype(jnp.float32)
    xb = x32.astype(jnp.bfloat16)
    hb = h32.astype(jnp.bfloat16)

    # Per-gate matmuls: each gate is a whole (D,H)/(H,H) slab along the
    # leading axis -> no lane-axis slicing; f32 accumulation on the MXU.
    gi_r = jnp.dot(xb, wih_t_ref[0], preferred_element_type=jnp.float32)
    gi_z = jnp.dot(xb, wih_t_ref[1], preferred_element_type=jnp.float32)
    gi_n = jnp.dot(xb, wih_t_ref[2], preferred_element_type=jnp.float32)
    gh_r = jnp.dot(hb, whh_t_ref[0], preferred_element_type=jnp.float32)
    gh_z = jnp.dot(hb, whh_t_ref[1], preferred_element_type=jnp.float32)
    gh_n = jnp.dot(hb, whh_t_ref[2], preferred_element_type=jnp.float32)

    b = b_ref[...].astype(jnp.float32)
    b_r, b_z = b[0:1, :], b[1:2, :]
    b_in, b_hn = b[2:3, :], b[3:4, :]

    r = jax.nn.sigmoid(gi_r + gh_r + b_r)
    z = jax.nn.sigmoid(gi_z + gh_z + b_z)
    n = jnp.tanh(gi_n + b_in + r * (gh_n + b_hn))

    o_ref[...] = ((1.0 - z) * n + z * h32).astype(o_ref.dtype)


def _gru_ode_euler_kernel(h_ref, whz_t_ref, whn_t_ref, dt_ref, o_ref, h_acc):
    """Fused explicit-Euler integration of the GRU-ODE on one batch tile.

    grid = (batch_tiles [parallel], n_steps [arbitrary]); weights stay
    resident in VMEM across the step axis; h is carried in a f32 scratch.

    h_ref     : (TB, H)   initial hidden tile (f32)
    whz_t_ref : (H, H)    lin_hz.weight.T (bf16, bias-free)
    whn_t_ref : (H, H)    lin_hn.weight.T (bf16, bias-free)
    dt_ref    : (1, 1)    sub-step size (f32)
    o_ref     : (TB, H)   final hidden tile (aliased with h input)
    h_acc     : (TB, H)   f32 VMEM carry
    """
    s = pl.program_id(1)

    @pl.when(s == 0)
    def _():
        h_acc[...] = h_ref[...].astype(jnp.float32)

    h = h_acc[...]
    z = jax.nn.sigmoid(
        jnp.dot(h.astype(jnp.bfloat16), whz_t_ref[...],
                preferred_element_type=jnp.float32))
    n = jnp.tanh(
        jnp.dot((z * h).astype(jnp.bfloat16), whn_t_ref[...],
                preferred_element_type=jnp.float32))
    dt = dt_ref[...]                           # (1,1), broadcasts
    h_acc[...] = h + dt * (1.0 - z) * (n - h)

    @pl.when(s == pl.num_programs(1) - 1)
    def _():
        o_ref[...] = h_acc[...].astype(o_ref.dtype)


# ---------------------------------------------------------------------------
# Wrappers around pallas_call
# ---------------------------------------------------------------------------

def gru_cell_pallas(x_obs, h_obs, w_ih_t, w_hh_t, b_all):
    n_obs, d = x_obs.shape
    hidden = h_obs.shape[-1]
    t_obs = _pick_tile(n_obs)

    flops = int(6 * n_obs * d * hidden + 6 * n_obs * hidden * hidden
                + 14 * n_obs * hidden)
    transc = int(3 * n_obs * hidden)
    bytes_acc = int(n_obs * d * 4 + 2 * n_obs * hidden * 4
                    + 3 * d * hidden * 2 + 3 * hidden * hidden * 2
                    + 4 * hidden * 4)

    return pl.pallas_call(
        _gru_cell_kernel,
        out_shape=jax.ShapeDtypeStruct((n_obs, hidden), h_obs.dtype),
        grid_spec=pltpu.PrefetchScalarGridSpec(
            num_scalar_prefetch=0,
            grid=(n_obs // t_obs,),
            in_specs=[
                pl.BlockSpec((t_obs, d), lambda i: (i, 0)),
                pl.BlockSpec((t_obs, hidden), lambda i: (i, 0)),
                pl.BlockSpec((3, d, hidden), lambda i: (0, 0, 0)),
                pl.BlockSpec((3, hidden, hidden), lambda i: (0, 0, 0)),
                pl.BlockSpec((4, hidden), lambda i: (0, 0)),
            ],
            out_specs=pl.BlockSpec((t_obs, hidden), lambda i: (i, 0)),
        ),
        compiler_params=pltpu.CompilerParams(
            dimension_semantics=("parallel",)),
        cost_estimate=pl.CostEstimate(
            flops=flops, transcendentals=transc, bytes_accessed=bytes_acc),
    )(x_obs, h_obs, w_ih_t, w_hh_t, b_all)


def gru_ode_euler_pallas(h, w_hz_t, w_hn_t, delta_t, n_steps):
    b_dim, hidden = h.shape
    tb = _pick_tile(b_dim)
    dt = (jnp.asarray(delta_t, jnp.float32) / n_steps).reshape(1, 1)

    flops = int(n_steps * (4 * b_dim * hidden * hidden + 8 * b_dim * hidden))
    transc = int(n_steps * 2 * b_dim * hidden)
    bytes_acc = int(2 * b_dim * hidden * 4 + 2 * hidden * hidden * 2 + 4)

    return pl.pallas_call(
        _gru_ode_euler_kernel,
        out_shape=jax.ShapeDtypeStruct((b_dim, hidden), h.dtype),
        grid_spec=pltpu.PrefetchScalarGridSpec(
            num_scalar_prefetch=0,
            grid=(b_dim // tb, n_steps),
            in_specs=[
                pl.BlockSpec((tb, hidden), lambda i, s: (i, 0)),
                pl.BlockSpec((hidden, hidden), lambda i, s: (0, 0)),
                pl.BlockSpec((hidden, hidden), lambda i, s: (0, 0)),
                pl.BlockSpec((1, 1), lambda i, s: (0, 0)),
            ],
            out_specs=pl.BlockSpec((tb, hidden), lambda i, s: (i, 0)),
            scratch_shapes=[pltpu.VMEM((tb, hidden), jnp.float32)],
        ),
        input_output_aliases={0: 0},
        compiler_params=pltpu.CompilerParams(
            dimension_semantics=("parallel", "arbitrary")),
        cost_estimate=pl.CostEstimate(
            flops=flops, transcendentals=transc, bytes_accessed=bytes_acc),
    )(h, w_hz_t, w_hn_t, dt)


# ---------------------------------------------------------------------------
# jitted forward glue (gather/scatter of observed rows stays in XLA)
# ---------------------------------------------------------------------------

@functools.partial(jax.jit, static_argnames=("n_steps",))
def _jit_ode_propagate(mgn_h, w_hz_t, w_hn_t, delta_t, *, n_steps):
    return gru_ode_euler_pallas(mgn_h, w_hz_t, w_hn_t, delta_t, n_steps)


@jax.jit
def _jit_obs_update(mgn_h, x_obs, i_obs, w_ih_t, w_hh_t, b_all):
    h_obs = mgn_h[i_obs]                                     # gather (glue)
    h_new = gru_cell_pallas(x_obs, h_obs, w_ih_t, w_hh_t, b_all)
    return mgn_h.at[i_obs].set(h_new)                        # scatter (glue)


# ---------------------------------------------------------------------------
# Module (parameter container)
# ---------------------------------------------------------------------------

class MgnGRUODE:
    """JAX/Pallas port of mgn_GRUODE (solver fixed to explicit Euler)."""

    def __init__(self, input_dim, memory_dim, key):
        self.input_dim = input_dim
        self.memory_dim = memory_dim
        H = input_dim * memory_dim
        self.hidden = H

        k = jax.random.split(key, 6)
        s = 1.0 / jnp.sqrt(H)
        # master f32 params (same shapes/init scheme as the PyTorch module)
        w_ih = jax.random.uniform(k[0], (3 * H, input_dim), jnp.float32, -s, s)
        w_hh = jax.random.uniform(k[1], (3 * H, H), jnp.float32, -s, s)
        b_ih = jax.random.uniform(k[2], (3 * H,), jnp.float32, -s, s)
        b_hh = jax.random.uniform(k[3], (3 * H,), jnp.float32, -s, s)
        w_hz = jax.random.uniform(k[4], (H, H), jnp.float32, -s, s)
        w_hn = jax.random.uniform(k[5], (H, H), jnp.float32, -s, s)

        # Kernel-ready weights: pre-transposed once, per-gate layout, bf16 MXU
        # operands (f32 accumulation happens inside the kernels).
        self.w_ih_t = jnp.transpose(
            w_ih.reshape(3, H, input_dim), (0, 2, 1)).astype(jnp.bfloat16)
        self.w_hh_t = jnp.transpose(
            w_hh.reshape(3, H, H), (0, 2, 1)).astype(jnp.bfloat16)
        # fold b_ih + b_hh for r/z gates; keep b_in / b_hn separate (b_hn * r)
        self.b_all = jnp.stack(
            [b_ih[0:H] + b_hh[0:H],
             b_ih[H:2 * H] + b_hh[H:2 * H],
             b_ih[2 * H:3 * H],
             b_hh[2 * H:3 * H]], axis=0).astype(jnp.float32)
        self.w_hz_t = w_hz.T.astype(jnp.bfloat16)
        self.w_hn_t = w_hn.T.astype(jnp.bfloat16)

    def forward(self, current_time, mgn_h, delta_t,
                X_obs=None, M_obs=None, i_obs=None, update=False, n_steps=1):
        del current_time
        if update:
            assert X_obs is not None and M_obs is not None and i_obs is not None
            del M_obs  # accepted but unused, as in the reference forward
            return _jit_obs_update(mgn_h, X_obs, i_obs,
                                   self.w_ih_t, self.w_hh_t, self.b_all)
        else:
            return _jit_ode_propagate(mgn_h, self.w_hz_t, self.w_hn_t,
                                      delta_t, n_steps=n_steps)


# ---------------------------------------------------------------------------
# Pure-JAX reference (same bf16-operand / f32-accumulate precision policy)
# ---------------------------------------------------------------------------

def _ref_ode(model, h, delta_t, n_steps):
    dt = delta_t / n_steps
    for _ in range(n_steps):
        z = jax.nn.sigmoid(jnp.dot(h.astype(jnp.bfloat16), model.w_hz_t,
                                   preferred_element_type=jnp.float32))
        n = jnp.tanh(jnp.dot((z * h).astype(jnp.bfloat16), model.w_hn_t,
                             preferred_element_type=jnp.float32))
        h = h + dt * (1.0 - z) * (n - h)
    return h


def _ref_update(model, mgn_h, x_obs, i_obs):
    h = mgn_h[i_obs]
    xb = x_obs.astype(jnp.bfloat16)
    hb = h.astype(jnp.bfloat16)
    gi = [jnp.dot(xb, model.w_ih_t[g], preferred_element_type=jnp.float32)
          for g in range(3)]
    gh = [jnp.dot(hb, model.w_hh_t[g], preferred_element_type=jnp.float32)
          for g in range(3)]
    b = model.b_all
    r = jax.nn.sigmoid(gi[0] + gh[0] + b[0])
    z = jax.nn.sigmoid(gi[1] + gh[1] + b[1])
    n = jnp.tanh(gi[2] + b[2] + r * (gh[2] + b[3]))
    return mgn_h.at[i_obs].set((1.0 - z) * n + z * h)


# ---------------------------------------------------------------------------
# Demo
# ---------------------------------------------------------------------------

if __name__ == "__main__":
    input_dim, memory_dim = 16, 8        # hidden H = 128 (lane-aligned)
    batch, n_obs = 16, 4
    delta_t = 0.05
    n_steps = 4                          # Euler sub-steps fused in one call

    key = jax.random.PRNGKey(0)
    k_model, k_h, k_x = jax.random.split(key, 3)

    model = MgnGRUODE(input_dim, memory_dim, k_model)

    mgn_h = jax.random.normal(k_h, (batch, model.hidden), jnp.float32)
    X_obs = jax.random.normal(k_x, (n_obs, input_dim), jnp.float32)
    M_obs = jnp.ones((n_obs, input_dim), jnp.float32)
    i_obs = jnp.array([0, 3, 5, 9], jnp.int32)

    # ODE (propagation) branch: fused multi-step Euler, weight-resident.
    h_ode = model.forward(0.0, mgn_h, delta_t, update=False, n_steps=n_steps)
    h_ode = jax.block_until_ready(h_ode)

    # Observation-update branch.
    h_upd = model.forward(0.0, h_ode, delta_t,
                          X_obs=X_obs, M_obs=M_obs, i_obs=i_obs, update=True)
    h_upd = jax.block_until_ready(h_upd)

    # Sanity check against pure-JAX reference (same precision policy).
    ref_ode = _ref_ode(model, mgn_h, delta_t, n_steps)
    ref_upd = _ref_update(model, ref_ode, X_obs, i_obs)
    assert jnp.allclose(h_ode, ref_ode, atol=1e-2, rtol=1e-2)
    assert jnp.allclose(h_upd, ref_upd, atol=1e-2, rtol=1e-2)

    print("KERNEL_OK")
</pallas_src>

<mosaic_0001>
module attributes {stable_mosaic.version = 11 : i64} {
  func.func @_gru_ode_euler_kernel(%arg0: i32, %arg1: i32, %arg2: memref<16x128xf32, #tpu.memory_space<vmem>>, %arg3: memref<128x128xbf16, #tpu.memory_space<vmem>>, %arg4: memref<128x128xbf16, #tpu.memory_space<vmem>>, %arg5: memref<1x1xf32, #tpu.memory_space<vmem>>, %arg6: memref<16x128xf32, #tpu.memory_space<vmem>>, %arg7: memref<16x128xf32, #tpu.memory_space<vmem>>) attributes {dimension_semantics = [#tpu.dimension_semantics<parallel>, #tpu.dimension_semantics<arbitrary>], iteration_bounds = array<i64: 1, 4>, scalar_prefetch = 0 : i64, scratch_operands = 1 : i64, tpu.core_type = #tpu.core_type<tc>, window_params = [{transform_indices = @transform_0, window_bounds = array<i64: 16, 128>}, {pipeline_mode = #tpu.pipeline_mode<synchronous>, transform_indices = @transform_1, window_bounds = array<i64: 128, 128>}, {pipeline_mode = #tpu.pipeline_mode<synchronous>, transform_indices = @transform_2, window_bounds = array<i64: 128, 128>}, {pipeline_mode = #tpu.pipeline_mode<synchronous>, transform_indices = @transform_3, window_bounds = array<i64: 1, 1>}, {transform_indices = @transform_4, window_bounds = array<i64: 16, 128>}]} {
    %c0_i32 = arith.constant 0 : i32
    %0 = arith.cmpi eq, %arg1, %c0_i32 : i32
    %1 = arith.extui %0 : i1 to i32
    %c0_i32_0 = arith.constant 0 : i32
    %2 = arith.cmpi ne, %1, %c0_i32_0 : i32
    scf.if %2 {
      %c0_14 = arith.constant 0 : index
      %c0_15 = arith.constant 0 : index
      %29 = vector.load %arg2[%c0_14, %c0_15] : memref<16x128xf32, #tpu.memory_space<vmem>>, vector<16x128xf32>
      %c0_16 = arith.constant 0 : index
      %c0_17 = arith.constant 0 : index
      %30 = vector.load %arg7[%c0_16, %c0_17] : memref<16x128xf32, #tpu.memory_space<vmem>>, vector<16x128xf32>
      tpu.vector_store %arg7[%c0_16, %c0_17], %29 {strides = array<i32>} : memref<16x128xf32, #tpu.memory_space<vmem>>, vector<16x128xf32>,
    } else {
    }
    %c0 = arith.constant 0 : index
    %c0_1 = arith.constant 0 : index
    %3 = vector.load %arg7[%c0, %c0_1] : memref<16x128xf32, #tpu.memory_space<vmem>>, vector<16x128xf32>
    %4 = arith.truncf %3 : vector<16x128xf32> to vector<16x128xbf16>
    %c0_2 = arith.constant 0 : index
    %c0_3 = arith.constant 0 : index
    %5 = vector.load %arg3[%c0_2, %c0_3] : memref<128x128xbf16, #tpu.memory_space<vmem>>, vector<128x128xbf16>
    %cst = arith.constant dense<0.000000e+00> : vector<16x128xf32>
    %6 = tpu.matmul %4, %5, %cst {dimension_numbers = #tpu.dot_dimension_numbers<[1], [0], [0], [1], [0, 0, 1, 1], [], []>} : vector<16x128xbf16>, vector<128x128xbf16>, vector<16x128xf32> -> vector<16x128xf32>
    %7 = arith.negf %6 : vector<16x128xf32>
    %8 = math.exp %7 : vector<16x128xf32>
    %cst_4 = arith.constant 1.000000e+00 : f32
    %9 = vector.broadcast %cst_4 : f32 to vector<16x128xf32>
    %10 = arith.addf %9, %8 : vector<16x128xf32>
    %11 = arith.divf %9, %10 : vector<16x128xf32>
    %12 = arith.mulf %11, %3 : vector<16x128xf32>
    %13 = arith.truncf %12 : vector<16x128xf32> to vector<16x128xbf16>
    %c0_5 = arith.constant 0 : index
    %c0_6 = arith.constant 0 : index
    %14 = vector.load %arg4[%c0_5, %c0_6] : memref<128x128xbf16, #tpu.memory_space<vmem>>, vector<128x128xbf16>
    %cst_7 = arith.constant dense<0.000000e+00> : vector<16x128xf32>
    %15 = tpu.matmul %13, %14, %cst_7 {dimension_numbers = #tpu.dot_dimension_numbers<[1], [0], [0], [1], [0, 0, 1, 1], [], []>} : vector<16x128xbf16>, vector<128x128xbf16>, vector<16x128xf32> -> vector<16x128xf32>
    %16 = math.tanh %15 : vector<16x128xf32>
    %c0_8 = arith.constant 0 : index
    %c0_9 = arith.constant 0 : index
    %17 = vector.load %arg5[%c0_8, %c0_9] : memref<1x1xf32, #tpu.memory_space<vmem>>, vector<1x1xf32>
    %cst_10 = arith.constant 1.000000e+00 : f32
    %18 = vector.broadcast %cst_10 : f32 to vector<16x128xf32>
    %19 = arith.subf %18, %11 : vector<16x128xf32>
    %20 = vector.broadcast %17 : vector<1x1xf32> to vector<16x128xf32>
    %21 = arith.mulf %20, %19 : vector<16x128xf32>
    %22 = arith.subf %16, %3 : vector<16x128xf32>
    %23 = arith.mulf %21, %22 : vector<16x128xf32>
    %24 = arith.addf %3, %23 : vector<16x128xf32>
    %c0_11 = arith.constant 0 : index
    %c0_12 = arith.constant 0 : index
    %25 = vector.load %arg7[%c0_11, %c0_12] : memref<16x128xf32, #tpu.memory_space<vmem>>, vector<16x128xf32>
    tpu.vector_store %arg7[%c0_11, %c0_12], %24 {strides = array<i32>} : memref<16x128xf32, #tpu.memory_space<vmem>>, vector<16x128xf32>,
    %c3_i32 = arith.constant 3 : i32
    %26 = arith.cmpi eq, %arg1, %c3_i32 : i32
    %27 = arith.extui %26 : i1 to i32
    %c0_i32_13 = arith.constant 0 : i32
    %28 = arith.cmpi ne, %27, %c0_i32_13 : i32
    scf.if %28 {
      %c0_14 = arith.constant 0 : index
      %c0_15 = arith.constant 0 : index
      %29 = vector.load %arg7[%c0_14, %c0_15] : memref<16x128xf32, #tpu.memory_space<vmem>>, vector<16x128xf32>
      %c0_16 = arith.constant 0 : index
      %c0_17 = arith.constant 0 : index
      %30 = vector.load %arg6[%c0_16, %c0_17] : memref<16x128xf32, #tpu.memory_space<vmem>>, vector<16x128xf32>
      tpu.vector_store %arg6[%c0_16, %c0_17], %29 {strides = array<i32>} : memref<16x128xf32, #tpu.memory_space<vmem>>, vector<16x128xf32>,
    } else {
    }
    return
  }
  func.func @transform_0(%arg0: i32, %arg1: i32) -> (i32, i32) {
    %c0_i32 = arith.constant 0 : i32
    %c0_i32_0 = arith.constant 0 : i32
    return %arg0, %c0_i32 : i32, i32
  }
  func.func @transform_1(%arg0: i32, %arg1: i32) -> (i32, i32) {
    %c0_i32 = arith.constant 0 : i32
    %c0_i32_0 = arith.constant 0 : i32
    %c0_i32_1 = arith.constant 0 : i32
    return %c0_i32, %c0_i32_0 : i32, i32
  }
  func.func @transform_2(%arg0: i32, %arg1: i32) -> (i32, i32) {
    %c0_i32 = arith.constant 0 : i32
    %c0_i32_0 = arith.constant 0 : i32
    %c0_i32_1 = arith.constant 0 : i32
    return %c0_i32, %c0_i32_0 : i32, i32
  }
  func.func @transform_3(%arg0: i32, %arg1: i32) -> (i32, i32) {
    %c0_i32 = arith.constant 0 : i32
    %c0_i32_0 = arith.constant 0 : i32
    %c0_i32_1 = arith.constant 0 : i32
    return %c0_i32, %c0_i32_0 : i32, i32
  }
  func.func @transform_4(%arg0: i32, %arg1: i32) -> (i32, i32) {
    %c0_i32 = arith.constant 0 : i32
    %c0_i32_0 = arith.constant 0 : i32
    return %arg0, %c0_i32 : i32, i32
  }
}

</mosaic_0001>

<bundles_post_ra>
// kernel: _jit_ode_propagate.1
= control target key start
LH: loop header
LB: loop body
LE: loop exit
PB: predicated region body
PF: predicated region fallthrough
CT: control target
= control target key end

     0   :  { %s1147_s0 = inlined_call_operand.hbm [shape: f32[16,128], index: 0, kind: input, shape index: {}, may-alias: {0,4}]   ;;  %s1148_s1 = inlined_call_operand.hbm [shape: bf16[128,128], index: 1, kind: input, shape index: {}]   ;;  %s1149_s2 = inlined_call_operand.hbm [shape: bf16[128,128], index: 2, kind: input, shape index: {}]   ;;  %s1150_s3 = inlined_call_operand.<no memory space> [shape: f32[1,1], index: 3, kind: input, shape index: {}]   ;;  %s1151_s4 = inlined_call_operand.hbm [shape: f32[16,128], index: 4, kind: output, shape index: {}, may-alias: {0,4}]  }
   0x1   :  { %v9_v0 = vstv %s1150_s3 }
   0x2   :  { %10 = vst [vmem:[#allocation3] sm:$0x1] %v9_v0 }
   0x3   :  { %11 = vsyncpa [#allocation5], 0 }
   0x4   :  { %12 = vsyncpa [#allocation8], 0 }
   0x5   :  { %13 = vsyncpa [#allocation6], 0  ;;  %s968_s17 = smov 0   ;;  %s970_s18 = smov 0  }
   0x6   :  { %s972_s19 = smov 0  }
   0x7 LB: > { %s927_s3 = smov [#allocation7]   ;;  %s589_s21 = sadd.s32 4294967295, %s925_s19   ;;  %s925_s19 = sphi %s972_s19, %s19_s19   ;;  %s921_s18 = sphi %s970_s18, %s1164_s18   ;;  %s917_s17 = sphi %s968_s17, %s1163_s17  }
   0x8   : > { %s179_s20 = sshll.u32 %s927_s3, 4  ;;  %p590_p0 = scmp.ge.s32.totalorder %s925_s19, 1  ;;  %s992_s20 = int_to_ptr.vmem [resolvable:$true] %s179_s20 }
   0x9   : > { %p151_p1 = scmp.lt.s32.totalorder %s925_s19, 5  ;;  %p988_p2 = scmp.eq.s32.totalorder %s589_s21, 0 }
   0xa   : > { %s28_s25 = sadd.s32 1, %s921_s18  ;;  %s928_s27 = smov [#allocation4]  }
   0xb   : > { %s1155_s22 = scalar_select %p988_p2, 1, 0 }
   0xc   : > { %p994_p3 = pnand %p590_p0, %p151_p1  ;;  %p1007_p6 = scmp.ge.s32.totalorder %s28_s25, 4 }
   0xd   : > { %s166_s28 = sshll.u32 %s928_s27, 4  ;;  %s781_s5 = scalar_lea.hbm %s1148_s1, 1024  ;;  %s167_s28 = int_to_ptr.vmem [resolvable:$true] %s166_s28 }
   0xe   : > { %s1156_s23 = scalar_select %p994_p3, 1, 0 }
   0xf   : > { %p697_p4 = pneg %p994_p3  ;;  %p782_p7 = scmp.ne.s32.totalorder %s1148_s1, %s781_s5 }
  0x10   : > { %p788_p11 = scmp.lt.u32.totalorder %s781_s5, %s1148_s1 }
  0x11   : > { %p1002_p5 = pnand %p988_p2, %p697_p4 }
  0x13   : > { %p1019_p8 = pneg %p1002_p5 }
  0x15   : > { %p784_p9 = pnand %p1019_p8, %p782_p7 }
  0x17   : > { %p785_p10 = pneg %p784_p9 }
  0x19   : > { %p790_p12 = pnand %p788_p11, %p785_p10 }
  0x1b   : > { %793 = shalt.err (!%p790_p12)
}
  0x1c   : > { %s794_s11 = scalar_lea.vmem %s992_s20, 1024  ;;  %p802_p4 = scmp.lt.s32.totalorder %s992_s20, %s992_s20 }
  0x1d   : > { %p795_p13 = scmp.ne.s32.totalorder %s992_s20, %s794_s11  ;;  %p803_p2 = scmp.lt.s32.totalorder %s794_s11, %s794_s11 }
  0x1f   : > { %p797_p0 = pnand %p795_p13, %p1019_p8  ;;  %p804_p7 = por %p803_p2, %p802_p4 }
  0x21   : > { %p798_p1 = pneg %p797_p0 }
  0x23   : > { %p805_p9 = pnand %p804_p7, %p798_p1 }
  0x25   : > { %808 = shalt.err (!%p805_p9)
}
  0x26   : > { %s929_s12 = smov 64   ;;  %s930_s13 = smov 4  }
  0x27   : > { %703 = dma.hbm_to_vmem [thread:$0]  (!%p1002_p5), %s1148_s1, 1024, %s992_s20, [#allocation8], %s929_s12, %s929_s12, %s930_s13  }
  0x28   : > { %s1166_s25 = smov (%p1007_p6, %s28_s25), 0  ;;  %s809_s27 = scalar_lea.hbm %s1147_s0, 256 }
  0x29   : > { %p810_p2 = scmp.ne.s32.totalorder %s1147_s0, %s809_s27  ;;  %p816_p12 = scmp.lt.u32.totalorder %s809_s27, %s1147_s0 }
  0x2b   : > { %p812_p10 = pnand %p810_p2, %p1019_p8 }
  0x2d   : > { %p813_p11 = pneg %p812_p10 }
  0x2f   : > { %p818_p13 = pnand %p816_p12, %p813_p11 }
  0x31   : > { %821 = shalt.err (!%p818_p13)
}
  0x32   : > { %s822_s20 = scalar_lea.vmem %s167_s28, 256  ;;  %p830_p4 = scmp.lt.s32.totalorder %s167_s28, %s167_s28 }
  0x33   : > { %p823_p6 = scmp.ne.s32.totalorder %s167_s28, %s822_s20  ;;  %p831_p7 = scmp.lt.s32.totalorder %s822_s20, %s822_s20 }
  0x35   : > { %p825_p0 = pnand %p823_p6, %p1019_p8  ;;  %p832_p9 = por %p831_p7, %p830_p4 }
  0x37   : > { %p826_p1 = pneg %p825_p0 }
  0x39   : > { %p833_p3 = pnand %p832_p9, %p826_p1 }
  0x3b   : > { %836 = shalt.err (!%p833_p3)
}
  0x3c   : > { %s931_s26 = smov 128   ;;  %s932_s7 = smov 8  }
  0x3d   : > { %700 = dma.hbm_to_vmem [thread:$0]  (!%p1002_p5), %s1147_s0, 256, %s167_s28, [#allocation5], %s931_s26, %s931_s26, %s932_s7  }
  0x3e   : > { %s933_s11 = smov [#allocation9]   ;;  %s837_s3 = scalar_lea.hbm %s1149_s2, 1024 }
  0x3f   : > { %s192_s14 = sshll.u32 %s933_s11, 4  ;;  %p838_p3 = scmp.ne.s32.totalorder %s1149_s2, %s837_s3  ;;  %s193_s14 = int_to_ptr.vmem [resolvable:$true] %s192_s14 }
  0x40   : > { %p844_p11 = scmp.lt.u32.totalorder %s837_s3, %s1149_s2 }
  0x41   : > { %p840_p2 = pnand %p838_p3, %p1019_p8 }
  0x43   : > { %p841_p10 = pneg %p840_p2 }
  0x45   : > { %p846_p12 = pnand %p844_p11, %p841_p10 }
  0x47   : > { %849 = shalt.err (!%p846_p12)
}
  0x48   : > { %s850_s28 = scalar_lea.vmem %s193_s14, 1024  ;;  %p858_p1 = scmp.lt.s32.totalorder %s193_s14, %s193_s14 }
  0x49   : > { %p851_p13 = scmp.ne.s32.totalorder %s193_s14, %s850_s28  ;;  %p859_p4 = scmp.lt.s32.totalorder %s850_s28, %s850_s28 }
  0x4b   : > { %p853_p6 = pnand %p851_p13, %p1019_p8  ;;  %p860_p7 = por %p859_p4, %p858_p1 }
  0x4d   : > { %p854_p0 = pneg %p853_p6 }
  0x4f   : > { %p861_p9 = pnand %p860_p7, %p854_p0 }
  0x51   : > { %864 = shalt.err (!%p861_p9)
}
  0x52   : > { %706 = dma.hbm_to_vmem [thread:$0]  (!%p1002_p5), %s1149_s2, 1024, %s193_s14, [#allocation8], %s929_s12, %s929_s12, %s930_s13  }
  0x53   : > { %p1160_p3 = scmp.ne.s32.totalorder %s1156_s23, 0 }
  0x54   : > { %p1161_p8 = scmp.ne.s32.totalorder (!%p1160_p3), %s1155_s22, 0 }
  0x55   : > { %211 = sbr.rel (%p1160_p3) target bundleno = 647 (0x287), region = 36 }
  0x5c   : > { %904 = dma.done.wait (%p1161_p8), [#allocation5], 256  }
  0x5d   : > { %906 = vsyncadd (%p1161_p8), [#allocation5], 4294967040 }
  0x5e   : > { %908 = dma.done.wait (%p1161_p8), [#allocation8], 2048  }
  0x5f   : > { %910 = vsyncadd (%p1161_p8), [#allocation8], 4294965248  ;;  %p598_p2 = scmp.ne.s32.totalorder %s917_s17, 0 }
  0x60   : > { %v242_v1 = vld [vmem:[#allocation4] sm:$0xff] (!%p598_p2)  ;;  %v243_v2 = vld [vmem:[#allocation4 + $0x8] sm:$0xff] (!%p598_p2) }
  0x61   : > { %241 = sbr.rel (%p598_p2) target bundleno = 104 (0x68), region = 52  ;;  %244 = vst [vmem:[#allocation2] sm:$0xff] (!%p598_p2), %v242_v1  ;;  %245 = vst [vmem:[#allocation2 + $0x8] sm:$0xff] (!%p598_p2), %v243_v2 }
  0x68 PF: > { %v753_v3 = vld [vmem:[#allocation7] sm:$0xff]   ;;  %v934_v4 = vmov 0.0   ;;  %v754_v5 = vld [vmem:[#allocation7 + $0x8] sm:$0xff]   ;;  %vm935_vm0 = vmmov 0   ;;  %v936_v6 = vmov 0   ;;  %v755_v7 = vld [vmem:[#allocation7 + $0x10] sm:$0xff]  }
  0x69   : > { %641 = vmatprep.subr.bf16.mxu0 %v934_v4  ;;  %661 = vmatprep.subr.bf16.mxu1 %v934_v4  ;;  %v756_v8 = vld [vmem:[#allocation7 + $0x18] sm:$0xff]   ;;  %v617_v9 = vld [vmem:[#allocation3] ss:$0 sm:$0xff]  ;;  %v757_v10 = vld [vmem:[#allocation7 + $0x20] sm:$0xff]   ;;  %p618_p5 = scmp.ne.s32.totalorder %s917_s17, 3 }
  0x6a   : > { %642 = vmatpush3.bf16.msra.mxu0 %v753_v3  ;;  %657 = vmatprep.mubr.msk.bf16.mxu0 %vm935_vm0, %v934_v4  ;;  %v758_v11 = vld [vmem:[#allocation7 + $0x28] sm:$0xff]   ;;  %v759_v12 = vld [vmem:[#allocation7 + $0x30] sm:$0xff]   ;;  %v760_v13 = vld [vmem:[#allocation7 + $0x38] sm:$0xff]  }
  0x6b   : > { %643 = vmatprep.subr.bf16.mxu0 %v934_v4  ;;  %752 = vset.pattern.permute.xlu0 %v936_v6  ;;  %v1097_v14 = vld [vmem:[#allocation2] sm:$0xff]  ;;  %v1099_v15 = vld [vmem:[#allocation2 + $0x8] sm:$0xff]  ;;  %v763_v19 = vld [vmem:[#allocation9 + $0x10] sm:$0xff]  }
  0x6c   : > { %677 = vmatprep.mubr.msk.bf16.mxu1 %vm935_vm0, %v934_v4  ;;  %485 = vperm.xlu0 %752, %v617_v9   ;;  %v248_v16 = vpack.c.bf16 %v1099_v15, %v1097_v14  ;;  %v761_v17 = vld [vmem:[#allocation9] sm:$0xff]   ;;  %v762_v18 = vld [vmem:[#allocation9 + $0x8] sm:$0xff]   ;;  %v764_v20 = vld [vmem:[#allocation9 + $0x18] sm:$0xff]  }
  0x6d   : > { %662 = vmatpush3.bf16.msra.mxu1 %v761_v17  ;;  %v765_v21 = vld [vmem:[#allocation9 + $0x20] sm:$0xff]   ;;  %v766_v22 = vld [vmem:[#allocation9 + $0x28] sm:$0xff]   ;;  %v767_v23 = vld [vmem:[#allocation9 + $0x30] sm:$0xff]  }
  0x6e   : > { %644 = vmatpush3.bf16.msra.mxu0 %v754_v5  ;;  %663 = vmatprep.subr.bf16.mxu1 %v934_v4  ;;  %v768_v24 = vld [vmem:[#allocation9 + $0x38] sm:$0xff]  }
  0x6f   : > { %645 = vmatprep.subr.bf16.mxu0 %v934_v4 }
  0x71   : > { %664 = vmatpush3.bf16.msra.mxu1 %v762_v18 }
  0x72   : > { %646 = vmatpush3.bf16.msra.mxu0 %v755_v7  ;;  %665 = vmatprep.subr.bf16.mxu1 %v934_v4 }
  0x73   : > { %647 = vmatprep.subr.bf16.mxu0 %v934_v4 }
  0x75   : > { %666 = vmatpush3.bf16.msra.mxu1 %v763_v19 }
  0x76   : > { %648 = vmatpush3.bf16.msra.mxu0 %v756_v8  ;;  %667 = vmatprep.subr.bf16.mxu1 %v934_v4 }
  0x77   : > { %649 = vmatprep.subr.bf16.mxu0 %v934_v4 }
  0x79   : > { %668 = vmatpush3.bf16.msra.mxu1 %v764_v20 }
  0x7a   : > { %650 = vmatpush3.bf16.msra.mxu0 %v757_v10  ;;  %669 = vmatprep.subr.bf16.mxu1 %v934_v4 }
  0x7b   : > { %651 = vmatprep.subr.bf16.mxu0 %v934_v4 }
  0x7d   : > { %670 = vmatpush3.bf16.msra.mxu1 %v765_v21 }
  0x7e   : > { %652 = vmatpush3.bf16.msra.mxu0 %v758_v11  ;;  %671 = vmatprep.subr.bf16.mxu1 %v934_v4 }
  0x7f   : > { %653 = vmatprep.subr.bf16.mxu0 %v934_v4 }
  0x81   : > { %672 = vmatpush3.bf16.msra.mxu1 %v766_v22 }
  0x82   : > { %654 = vmatpush3.bf16.msra.mxu0 %v759_v12  ;;  %673 = vmatprep.subr.bf16.mxu1 %v934_v4 }
  0x83   : > { %655 = vmatprep.subr.bf16.mxu0 %v934_v4 }
  0x85   : > { %674 = vmatpush3.bf16.msra.mxu1 %v767_v23 }
  0x86   : > { %656 = vmatpush3.bf16.msra.mxu0 %v760_v13  ;;  %675 = vmatprep.subr.bf16.mxu1 %v934_v4 }
  0x89   : > { %658 = vmatmul.mubr.bf16.vlgmr.msra.gmra.mrb[0].mxu0 %v248_v16  ;;  %676 = vmatpush3.bf16.msra.mxu1 %v768_v24 }
  0xeb   : > { %v486_v45 = vpop.permute.xlu0 %485 }
 0x15c   : > { %v347_v25 = vpop.f32.mrb[0].mxu0 }
 0x15d   : > { %v607_v26 = vmul.f32 -1.442695, %v347_v25  ;;  %v659_v27 = vpop.f32.mrb[1].mxu0 }
 0x15e   : > { %v350_v28 = vpop.f32.mrb[2].mxu0 }
 0x15f   : > { %769 = vpow2.f32 %v607_v26  ;;  %v608_v29 = vmul.f32 -1.442695, %v350_v28  ;;  %v660_v30 = vpop.f32.mrb[3].mxu0 }
 0x161   : > { %771 = vpow2.f32 %v608_v29 }
 0x169   : > { %v770_v31 = vpop.eup %769 }
 0x16a   : > { %v360_v32 = vadd.f32 1.0, %v770_v31 }
 0x16b   : > { %v772_v33 = vpop.eup %771 }
 0x16c   : > { %773 = vrcp.f32 %v360_v32  ;;  %v361_v34 = vadd.f32 1.0, %v772_v33 }
 0x16e   : > { %775 = vrcp.f32 %v361_v34 }
 0x176   : > { %v774_v35 = vpop.eup %773 }
 0x177   : > { %v366_v37 = vmul.f32 %v774_v35, %v1097_v14  ;;  %v477_v44 = vsub.f32 1.0, %v774_v35 }
 0x178   : > { %v776_v36 = vpop.eup %775 }
 0x179   : > { %v367_v38 = vmul.f32 %v776_v36, %v1099_v15  ;;  %v478_v46 = vsub.f32 1.0, %v776_v36  ;;  %v488_v48 = vmul.f32 %v486_v45, %v477_v44 }
 0x17b   : > { %v368_v39 = vpack.c.bf16 %v367_v38, %v366_v37  ;;  %v489_v51 = vmul.f32 %v486_v45, %v478_v46 }
 0x17d   : > { %678 = vmatmul.mubr.bf16.vlgmr.msra.gmra.mrb[0].mxu1 %v368_v39 }
 0x250   : > { %v467_v40 = vpop.f32.mrb[0].mxu1 }
 0x251   : > { %777 = vtanh.f32 %v467_v40  ;;  %v679_v41 = vpop.f32.mrb[1].mxu1 }
 0x252   : > { %v470_v42 = vpop.f32.mrb[2].mxu1 }
 0x253   : > { %779 = vtanh.f32 %v470_v42  ;;  %v680_v43 = vpop.f32.mrb[3].mxu1 }
 0x25b   : > { %v778_v47 = vpop.eup %777 }
 0x25c   : > { %v490_v49 = vsub.f32 %v778_v47, %v1097_v14 }
 0x25d   : > { %v780_v50 = vpop.eup %779 }
 0x25e   : > { %v492_v52 = vmul.f32 %v490_v49, %v488_v48  ;;  %v491_v53 = vsub.f32 %v780_v50, %v1099_v15  ;;  %501 = sbr.rel (%p618_p5) target bundleno = 621 (0x26d), region = 56 }
 0x260   : > { %v494_v54 = vadd.f32 %v492_v52, %v1097_v14  ;;  %v493_v55 = vmul.f32 %v491_v53, %v489_v51 }
 0x262   : > { %496 = vst [vmem:[#allocation2] sm:$0xff] %v494_v54  ;;  %v495_v56 = vadd.f32 %v493_v55, %v1099_v15 }
 0x264   : > { %497 = vst [vmem:[#allocation2 + $0x8] sm:$0xff] %v495_v56 }
 0x269   : > { %v502_v57 = vld [vmem:[#allocation2] sm:$0xff] }
 0x26a   : > { %504 = vst [vmem:[#allocation10] sm:$0xff] %v502_v57 }
 0x26b   : > { %v503_v58 = vld [vmem:[#allocation2 + $0x8] sm:$0xff] }
 0x26c   : > { %505 = vst [vmem:[#allocation10 + $0x8] sm:$0xff] %v503_v58 }
 0x26d PF: > { %p1112_p10 = scmp.eq.s32.totalorder %s589_s21, 3  ;;  %s937_s23 = smov [#allocation10]  }
 0x26e   : > { %s515_s24 = sshll.u32 %s937_s23, 4  ;;  %s516_s24 = int_to_ptr.vmem [resolvable:$true] %s515_s24 }
 0x26f   : > { %s865_s8 = scalar_lea.vmem %s516_s24, 256  ;;  %p872_p6 = scmp.lt.s32.totalorder %s516_s24, %s516_s24 }
 0x270   : > { %p866_p11 = scmp.ne.s32.totalorder %s516_s24, %s865_s8  ;;  %p873_p0 = scmp.lt.s32.totalorder %s865_s8, %s865_s8 }
 0x272   : > { %p867_p12 = pnand %p866_p11, %p1112_p10  ;;  %p874_p1 = por %p873_p0, %p872_p6 }
 0x274   : > { %p868_p13 = pneg %p867_p12 }
 0x276   : > { %p875_p4 = pnand %p874_p1, %p868_p13 }
 0x278   : > { %878 = shalt.err (!%p875_p4)
}
 0x279   : > { %s879_s21 = scalar_lea.hbm %s1151_s4, 256 }
 0x27a   : > { %p880_p7 = scmp.ne.s32.totalorder %s1151_s4, %s879_s21  ;;  %p885_p8 = scmp.lt.u32.totalorder %s879_s21, %s1151_s4 }
 0x27c   : > { %p881_p9 = pnand %p880_p7, %p1112_p10 }
 0x27e   : > { %p882_p3 = pneg %p881_p9 }
 0x280   : > { %p887_p2 = pnand %p885_p8, %p882_p3 }
 0x282   : > { %890 = shalt.err (!%p887_p2)
}
 0x283   : > { %s938_s10 = smov 128   ;;  %s939_s11 = smov 8  }
 0x284   : > { %694 = dma.vmem_to_hbm [thread:$0]  (%p1112_p10), %s516_s24, 256, %s1151_s4, [#allocation6], %s938_s10, %s938_s10, %s939_s11  }
 0x285   : > { %912 = dma.done.wait (%p1112_p10), [#allocation6], 256  }
 0x286   : > { %914 = vsyncadd (%p1112_p10), [#allocation6], 4294967040 }
 0x287 PF: > { %s19_s19 = sadd.s32 1, %s925_s19   ;;  %s1163_s17 = smov %s921_s18 }
 0x288   : > { %p16_p5 = scmp.ge.s32.totalorder %s19_s19, 6   ;;  %s1164_s18 = smov %s1166_s25 }
 0x28a   :  { %18 = sbr.rel (!%p16_p5) target bundleno = 7 (0x7), region = 83 }
 0x291   :  { %531 = vsyncpa [#allocation5], 1 }
 0x292   :  { %533 = vsyncpa [#allocation5 + $0x1], 1 }
 0x293   :  { %534 = vsyncpa [#allocation8], 1 }
 0x294   :  { %535 = vsyncpa [#allocation6], 1 }
 0x295   :  { %537 = vsyncpa [#allocation6 + $0x1], 1 }

</bundles_post_ra>
